<compile_context>
chip_gen: v5e
topology: v5e:2x2
jax: 0.10.0
libtpu: 0.0.40
codegen_flags: <defaults>
</compile_context>

<pallas_src>
import functools

import jax
import jax.numpy as jnp
from jax.experimental import pallas as pl
from jax.experimental.pallas import tpu as pltpu


_TARGET_BLOCK_BYTES = 2 * 1024 * 1024   # ~2 MiB per input block (past the measured
                                        # per-grid-step-overhead knee); 2 inputs x
                                        # 2 pipeline buffers = 8 MiB of VMEM.
_MAX_TILE_LANES = 32 * 128              # <=32 unrolled 128-lane chunks per block
_VMEM_LIMIT_BYTES = 32 * 1024 * 1024    # raises v5e's 16 MiB default, safe on v7x (64 MiB)


def _round_up(x, m):
    return (x + m - 1) // m * m


def _fold_factor(b, f, row_cap):
    """Largest power-of-two `sub` with f % sub == 0, b*sub <= row_cap and
    f//sub >= 128, so small batches still fill (8,128) tiles (free row-major
    reshape; original row i maps to folded rows [i*sub, (i+1)*sub))."""
    sub = 1
    while (f % (sub * 2) == 0
           and b * sub * 2 <= row_cap
           and f // (sub * 2) >= 128):
        sub *= 2
    return sub


def _chunk_vals(t_ref, s_ref, c):
    """Load one 128-lane chunk of both inputs as f32 (static slice -> no cost)."""
    lo, hi = c * 128, (c + 1) * 128
    t = t_ref[:, lo:hi].astype(jnp.float32)
    s = s_ref[:, lo:hi].astype(jnp.float32)
    return t, s


def _lane_mask(shape, lanes_valid):
    lane = jax.lax.broadcasted_iota(jnp.int32, shape, 1)
    return lane < lanes_valid


def _chunk_loops(k, add_chunk, *, full_chunks, last_chunks, last_lanes, nblocks):
    """Mask-free bulk path; separate (shorter) path for the last, partial block."""
    def tail_body():
        for c in range(last_chunks):
            add_chunk(c)
        if last_lanes:
            add_chunk(last_chunks, lanes_valid=last_lanes)

    has_tail = (last_chunks != full_chunks) or (last_lanes != 0)
    if not has_tail:
        for c in range(full_chunks):
            add_chunk(c)
    elif nblocks == 1:
        tail_body()
    else:
        @pl.when(k < nblocks - 1)
        def _():
            for c in range(full_chunks):
                add_chunk(c)

        @pl.when(k == nblocks - 1)
        def _():
            tail_body()


def _mse_kernel(t_ref, s_ref, o_ref, *, full_chunks, last_chunks, last_lanes, nblocks):
    k = pl.program_id(0)

    @pl.when(k == 0)
    def _():
        o_ref[...] = jnp.zeros_like(o_ref)

    def add_chunk(c, lanes_valid=None):
        t, s = _chunk_vals(t_ref, s_ref, c)
        d = s - t
        v = d * d
        if lanes_valid is not None:
            # select: garbage/NaN in the DMA padding region cannot propagate.
            v = jnp.where(_lane_mask(v.shape, lanes_valid), v, 0.0)
        o_ref[...] += v          # accumulate into the resident output block

    _chunk_loops(k, add_chunk, full_chunks=full_chunks, last_chunks=last_chunks,
                 last_lanes=last_lanes, nblocks=nblocks)


def _cosine_kernel(t_ref, s_ref, ts_ref, tt_ref, ss_ref, *,
                   full_chunks, last_chunks, last_lanes, nblocks):
    k = pl.program_id(0)

    @pl.when(k == 0)
    def _():
        ts_ref[...] = jnp.zeros_like(ts_ref)
        tt_ref[...] = jnp.zeros_like(tt_ref)
        ss_ref[...] = jnp.zeros_like(ss_ref)

    def add_chunk(c, lanes_valid=None):
        t, s = _chunk_vals(t_ref, s_ref, c)
        if lanes_valid is not None:
            m = _lane_mask(t.shape, lanes_valid)
            t = jnp.where(m, t, 0.0)
            s = jnp.where(m, s, 0.0)
        ts_ref[...] += t * s
        tt_ref[...] += t * t
        ss_ref[...] += s * s

    _chunk_loops(k, add_chunk, full_chunks=full_chunks, last_chunks=last_chunks,
                 last_lanes=last_lanes, nblocks=nblocks)


def distillation_loss(teacher_features, student_features, loss_function="MSE",
                      *, target_block_bytes=_TARGET_BLOCK_BYTES,
                      max_tile_lanes=_MAX_TILE_LANES):
    """Pallas equivalent of DistillationLoss.forward (inputs are NCHW)."""
    if loss_function not in ("MSE", "cosine"):
        raise ValueError("no valid loss function given")
    assert teacher_features.shape == student_features.shape
    b = teacher_features.shape[0]
    n_elems = teacher_features.size
    f = n_elems // b

    # Flatten to (B, F): free row-major reshape == torch `.view(B, -1)`.
    # Keep the native dtype (bf16 stays bf16) so HBM traffic stays minimal.
    t2 = teacher_features.reshape(b, f)
    s2 = student_features.reshape(b, f)

    itemsize = jnp.dtype(t2.dtype).itemsize
    # 2-byte dtypes fold to taller tiles so HBM blocks still reach ~2 MiB/input.
    row_cap = 256 if itemsize <= 2 else 128
    sub = _fold_factor(b, f, row_cap)
    rows, fr = b * sub, f // sub
    t2 = t2.reshape(rows, fr)
    s2 = s2.reshape(rows, fr)

    max_tile_lanes = max(128, (max_tile_lanes // 128) * 128)
    lanes_target = max(128, (target_block_bytes // (rows * itemsize)) // 128 * 128)
    tile_f = int(min(lanes_target, max_tile_lanes, _round_up(fr, 128)))
    nblocks = int(pl.cdiv(fr, tile_f))            # exact grid: no padded/duplicate steps
    rem = fr - (nblocks - 1) * tile_f             # valid lanes in the last block
    kw = dict(full_chunks=tile_f // 128,
              last_chunks=rem // 128,
              last_lanes=rem % 128,
              nblocks=nblocks)

    in_spec = pl.BlockSpec((rows, tile_f), lambda k: (0, k))
    out_spec = pl.BlockSpec((rows, 128), lambda k: (0, 0))   # resident across the reduction axis
    out_struct = jax.ShapeDtypeStruct((rows, 128), jnp.float32)
    cparams = pltpu.CompilerParams(
        dimension_semantics=("arbitrary",),       # reduction axis -> accumulator stays resident
        vmem_limit_bytes=_VMEM_LIMIT_BYTES,
    )

    if loss_function == "MSE":
        partial_sums = pl.pallas_call(
            functools.partial(_mse_kernel, **kw),
            out_shape=out_struct,
            grid_spec=pltpu.PrefetchScalarGridSpec(
                num_scalar_prefetch=0, grid=(nblocks,),
                in_specs=[in_spec, in_spec], out_specs=out_spec),
            compiler_params=cparams,
        )(t2, s2)
        return jnp.sum(partial_sums) / n_elems

    # cosine
    ts, tt, ss = pl.pallas_call(
        functools.partial(_cosine_kernel, **kw),
        out_shape=(out_struct, out_struct, out_struct),
        grid_spec=pltpu.PrefetchScalarGridSpec(
            num_scalar_prefetch=0, grid=(nblocks,),
            in_specs=[in_spec, in_spec],
            out_specs=[out_spec, out_spec, out_spec]),
        compiler_params=cparams,
    )(t2, s2)

    def per_row(x):  # (rows, 128) -> (b,)   (single cross-lane reduce, outside kernel)
        return x.sum(axis=1).reshape(b, sub).sum(axis=1)

    ts_r, tt_r, ss_r = per_row(ts), per_row(tt), per_row(ss)
    eps = jnp.float32(1e-8)
    denom = jnp.maximum(jnp.sqrt(tt_r) * jnp.sqrt(ss_r), eps)
    # target == +1  =>  loss_i = 1 - cos_i, reduced with mean over batch
    return jnp.mean(1.0 - ts_r / denom)


def _reference(teacher, student, loss_function):
    t = teacher.astype(jnp.float32)
    s = student.astype(jnp.float32)
    if loss_function == "MSE":
        return jnp.mean((s - t) ** 2)
    b = t.shape[0]
    t2 = t.reshape(b, -1)
    s2 = s.reshape(b, -1)
    num = jnp.sum(t2 * s2, axis=1)
    den = jnp.maximum(
        jnp.sqrt(jnp.sum(t2 * t2, axis=1)) * jnp.sqrt(jnp.sum(s2 * s2, axis=1)),
        1e-8,
    )
    return jnp.mean(1.0 - num / den)


if __name__ == "__main__":
    rng = jax.random.PRNGKey(0)
    cases = [
        # (shape NCHW, dtype, wrapper kwargs)
        ((2, 4, 16, 16), jnp.float32, {}),                        # aligned, single block
        ((3, 5, 9, 7),   jnp.float32, {}),                        # ragged tail, single block
        ((3, 5, 9, 7),   jnp.float32, {"max_tile_lanes": 128}),   # multi-block + ragged tail branch
        ((4, 8, 32, 32), jnp.float32, {"max_tile_lanes": 128}),   # multi-block, mask-free path
        ((2, 4, 16, 16), jnp.bfloat16, {}),                       # native low-precision streaming
    ]
    for idx, (shape, dtype, kwargs) in enumerate(cases):
        k1, k2 = jax.random.split(jax.random.fold_in(rng, idx))
        teacher = jax.random.normal(k1, shape, dtype=jnp.float32).astype(dtype)
        student = jax.random.normal(k2, shape, dtype=jnp.float32).astype(dtype)
        for mode in ("MSE", "cosine"):
            got = jax.block_until_ready(
                distillation_loss(teacher, student, mode, **kwargs))
            ref = _reference(teacher, student, mode)
            assert jnp.allclose(got, ref, rtol=1e-5, atol=1e-5), \
                (shape, str(dtype), mode, float(got), float(ref))

    print("KERNEL_OK")
</pallas_src>

<mosaic_0001>
module attributes {stable_mosaic.version = 11 : i64} {
  func.func @_mse_kernel(%arg0: i32, %arg1: memref<16x128xf32, #tpu.memory_space<vmem>>, %arg2: memref<16x128xf32, #tpu.memory_space<vmem>>, %arg3: memref<16x128xf32, #tpu.memory_space<vmem>>) attributes {dimension_semantics = [#tpu.dimension_semantics<arbitrary>], iteration_bounds = array<i64: 1>, scalar_prefetch = 0 : i64, scratch_operands = 0 : i64, tpu.core_type = #tpu.core_type<tc>, window_params = [{transform_indices = @transform_0, window_bounds = array<i64: 16, 128>}, {transform_indices = @transform_1, window_bounds = array<i64: 16, 128>}, {pipeline_mode = #tpu.pipeline_mode<synchronous>, transform_indices = @transform_2, window_bounds = array<i64: 16, 128>}]} {
    %c0_i32 = arith.constant 0 : i32
    %0 = arith.cmpi eq, %arg0, %c0_i32 : i32
    %1 = arith.extui %0 : i1 to i32
    %c0_i32_0 = arith.constant 0 : i32
    %2 = arith.cmpi ne, %1, %c0_i32_0 : i32
    scf.if %2 {
      %cst = arith.constant 0.000000e+00 : f32
      %10 = vector.broadcast %cst : f32 to vector<16x128xf32>
      %c0_8 = arith.constant 0 : index
      %c0_9 = arith.constant 0 : index
      %11 = vector.load %arg3[%c0_8, %c0_9] : memref<16x128xf32, #tpu.memory_space<vmem>>, vector<16x128xf32>
      tpu.vector_store %arg3[%c0_8, %c0_9], %10 {strides = array<i32>} : memref<16x128xf32, #tpu.memory_space<vmem>>, vector<16x128xf32>,
    } else {
    }
    %c0 = arith.constant 0 : index
    %c0_1 = arith.constant 0 : index
    %3 = vector.load %arg1[%c0, %c0_1] : memref<16x128xf32, #tpu.memory_space<vmem>>, vector<16x128xf32>
    %c0_2 = arith.constant 0 : index
    %c0_3 = arith.constant 0 : index
    %4 = vector.load %arg2[%c0_2, %c0_3] : memref<16x128xf32, #tpu.memory_space<vmem>>, vector<16x128xf32>
    %5 = arith.subf %4, %3 : vector<16x128xf32>
    %6 = arith.mulf %5, %5 : vector<16x128xf32>
    %c0_4 = arith.constant 0 : index
    %c0_5 = arith.constant 0 : index
    %7 = vector.load %arg3[%c0_4, %c0_5] : memref<16x128xf32, #tpu.memory_space<vmem>>, vector<16x128xf32>
    %8 = arith.addf %7, %6 : vector<16x128xf32>
    %c0_6 = arith.constant 0 : index
    %c0_7 = arith.constant 0 : index
    %9 = vector.load %arg3[%c0_6, %c0_7] : memref<16x128xf32, #tpu.memory_space<vmem>>, vector<16x128xf32>
    tpu.vector_store %arg3[%c0_6, %c0_7], %8 {strides = array<i32>} : memref<16x128xf32, #tpu.memory_space<vmem>>, vector<16x128xf32>,
    return
  }
  func.func @transform_0(%arg0: i32) -> (i32, i32) {
    %c0_i32 = arith.constant 0 : i32
    %c0_i32_0 = arith.constant 0 : i32
    return %c0_i32, %arg0 : i32, i32
  }
  func.func @transform_1(%arg0: i32) -> (i32, i32) {
    %c0_i32 = arith.constant 0 : i32
    %c0_i32_0 = arith.constant 0 : i32
    return %c0_i32, %arg0 : i32, i32
  }
  func.func @transform_2(%arg0: i32) -> (i32, i32) {
    %c0_i32 = arith.constant 0 : i32
    %c0_i32_0 = arith.constant 0 : i32
    %c0_i32_1 = arith.constant 0 : i32
    return %c0_i32, %c0_i32_0 : i32, i32
  }
}

</mosaic_0001>

<bundles_post_ra>
// kernel: tpu_custom_call.1
= control target key start
LH: loop header
LB: loop body
LE: loop exit
PB: predicated region body
PF: predicated region fallthrough
CT: control target
= control target key end

     0   :  { %7 = vsyncpa [#allocation3], 0  ;;  %s206_s0 = inlined_call_operand.hbm [shape: f32[16,128], index: 0, kind: input, shape index: {}]   ;;  %s207_s1 = inlined_call_operand.hbm [shape: f32[16,128], index: 1, kind: input, shape index: {}]   ;;  %s208_s2 = inlined_call_operand.hbm [shape: f32[16,128], index: 2, kind: output, shape index: {}]  }
   0x1   :  { %8 = vsyncpa [#allocation6], 0 }
   0x2   :  { %9 = vsyncpa [#allocation4], 0  ;;  %s14_s11 = sshll.u32 %s206_s0, 4  ;;  %s168_s12 = smov [#allocation2]   ;;  %s15_s11 = int_to_ptr.hbm [resolvable:$true] %s14_s11 }
   0x3   :  { %s16_s13 = sshll.u32 %s168_s12, 4  ;;  %s27_s16 = sshll.u32 %s207_s1, 4  ;;  %s17_s13 = int_to_ptr.vmem [resolvable:$true] %s16_s13  ;;  %s28_s16 = int_to_ptr.hbm [resolvable:$true] %s27_s16 }
   0x4   :  { %s169_s17 = smov 128   ;;  %s170_s18 = smov 8  }
   0x5   :  { %22 = dma.hbm_to_vmem [thread:$0]  %s15_s11, 256, %s17_s13, [#allocation3], %s169_s17, %s169_s17, %s170_s18  }
   0x6   :  { %s171_s19 = smov [#allocation5]  }
   0x7   :  { %s29_s20 = sshll.u32 %s171_s19, 4  ;;  %s30_s20 = int_to_ptr.vmem [resolvable:$true] %s29_s20 }
   0x8   :  { %35 = dma.hbm_to_vmem [thread:$0]  %s28_s16, 256, %s30_s20, [#allocation6], %s169_s17, %s169_s17, %s170_s18  }
   0x9   :  { %162 = dma.done.wait [#allocation3], 256  }
   0xa   :  { %163 = vsyncadd [#allocation3], 4294967040 }
   0xb   :  { %164 = dma.done.wait [#allocation6], 256  }
   0xc   :  { %165 = vsyncadd [#allocation6], 4294967040  ;;  %v50_v0 = vld [vmem:[#allocation2] sm:$0xff]  ;;  %v52_v1 = vld [vmem:[#allocation5] sm:$0xff]  ;;  %s172_s0 = smov [#allocation7]   ;;  %s70_s23 = sshll.u32 %s208_s2, 4  ;;  %s71_s23 = int_to_ptr.hbm [resolvable:$true] %s70_s23 }
   0xd   :  { %v51_v2 = vld [vmem:[#allocation2 + $0x8] sm:$0xff]  ;;  %v54_v3 = vsub.f32 %v52_v1, %v50_v0  ;;  %v53_v4 = vld [vmem:[#allocation5 + $0x8] sm:$0xff]  ;;  %s68_s1 = sshll.u32 %s172_s0, 4  ;;  %s69_s1 = int_to_ptr.vmem [resolvable:$true] %s68_s1 }
   0xe   :  { %v55_v5 = vsub.f32 %v53_v4, %v51_v2 }
   0xf   :  { %v56_v6 = vmul.f32 %v54_v3, %v54_v3 }
  0x10   :  { %v57_v7 = vmul.f32 %v55_v5, %v55_v5 }
  0x11   :  { %62 = vst [vmem:[#allocation7] sm:$0xff] %v56_v6 }
  0x12   :  { %63 = vst [vmem:[#allocation7 + $0x8] sm:$0xff] %v57_v7 }
  0x13   :  { %76 = dma.vmem_to_hbm [thread:$0]  %s69_s1, 256, %s71_s23, [#allocation4], %s169_s17, %s169_s17, %s170_s18  }
  0x14   :  { %166 = dma.done.wait [#allocation4], 256  }
  0x15   :  { %167 = vsyncadd [#allocation4], 4294967040 }
  0x16   :  { %81 = vsyncpa [#allocation3], 1 }
  0x17   :  { %82 = vsyncpa [#allocation6], 1 }
  0x18   :  { %83 = vsyncpa [#allocation4], 1 }

</bundles_post_ra>
